<compile_context>
chip_gen: v5e
topology: v5e:2x2
jax: 0.10.0
libtpu: 0.0.40
codegen_flags: <defaults>
</compile_context>

<pallas_src>
import functools

import jax
import jax.numpy as jnp
from jax.experimental import pallas as pl
from jax.experimental.pallas import tpu as pltpu

_LANES = 128
_MIB = 1024 * 1024
_MIN_GRID_STEPS = 4  # so v7x's two TensorCores both get work on mid-size tensors


# ----------------------------- Pallas kernel ------------------------------ #
def _fake_quant_kernel(x_ref, o_ref, *, scale, inv_scale, q_lo, q_hi):
    """Elementwise fake-quantize of one (block_rows, 128) tile.

    out = clamp(round(x * inv_scale), q_lo, q_hi) * scale
    where q_lo/q_hi already have the (integer) zero_point folded in, so the
    add/sub of zero_point is eliminated.  jnp.round is round-half-to-even,
    matching torch's std::nearbyint.  All qparams are compile-time constants.
    """
    x = x_ref[...].astype(jnp.float32)
    q = jnp.clip(jnp.round(x * inv_scale), q_lo, q_hi)
    o_ref[...] = (q * scale).astype(o_ref.dtype)


# ------------------------- block-size / VMEM budget ------------------------ #
def _vmem_budget():
    """(target_block_bytes, vmem_limit_bytes), generation-aware but robust."""
    phys = 0
    try:
        info = pltpu.get_tpu_info()
        phys = int(getattr(info, "vmem_capacity_bytes", 0))
    except Exception:
        phys = 0
    if phys <= 0:
        phys = 64 * _MIB  # conservative assumption (v7x-class physical VMEM)
    # Leave at least half of physical VMEM for internal scratch / other users.
    vmem_limit = min(48 * _MIB, phys // 2)
    # in + out, double-buffered => 4 live block-sized buffers; keep them at
    # <= half of the scoped limit so there is comfortable headroom.
    target_block = max(1 * _MIB, min(6 * _MIB, vmem_limit // 8))
    return target_block, vmem_limit


# ------------------------------- wrapper ----------------------------------- #
def fake_quantize_per_tensor_affine(x, scale, zero_point, quant_min, quant_max):
    """Per-tensor affine fake quantize with fixed (Python-scalar) qparams."""
    orig_shape = x.shape
    dtype = x.dtype
    total = x.size
    if total == 0:
        return x

    scale = float(scale)
    inv_scale = 1.0 / scale
    zp = int(zero_point)
    q_lo = float(int(quant_min) - zp)   # zero_point folded into the clamp bounds
    q_hi = float(int(quant_max) - zp)

    def _jnp_epilogue(v):
        # Fused XLA elementwise path for tiny remainders (< 128 elements).
        q = jnp.clip(jnp.round(v.astype(jnp.float32) * inv_scale), q_lo, q_hi)
        return (q * scale).astype(dtype)

    flat = jnp.ravel(x)                       # layout-preserving, no HBM copy
    n_bulk = (total // _LANES) * _LANES       # lane-aligned bulk handled by Pallas

    if n_bulk == 0:
        # Fewer than 128 elements: a kernel launch would be pure overhead.
        return _jnp_epilogue(flat).reshape(orig_shape)

    bulk = flat if n_bulk == total else flat[:n_bulk]
    rows = n_bulk // _LANES
    slab = bulk.reshape(rows, _LANES)         # lane-dense 2-D layout

    itemsize = jnp.dtype(dtype).itemsize
    pack = max(1, 4 // itemsize)              # sublane packing: 1 f32, 2 bf16, 4 i8
    row_align = 8 * pack                      # sublane granularity for block shape

    target_block_bytes, vmem_limit = _vmem_budget()
    desired = (target_block_bytes // (_LANES * itemsize)) // row_align * row_align
    desired = max(row_align, desired)

    # Cap block_rows so the grid has >= _MIN_GRID_STEPS steps when possible
    # (lets the "parallel" axis shard across both v7x TensorCores).
    per_step = -(-rows // _MIN_GRID_STEPS)                # ceil-div
    per_step = -(-per_step // row_align) * row_align      # round up to row_align
    block_rows = min(desired, per_step)
    if block_rows >= rows:
        block_rows = rows                                  # full extent (always legal)
    grid = (pl.cdiv(rows, block_rows),)                    # ragged last block is fine

    kernel = functools.partial(
        _fake_quant_kernel,
        scale=scale,
        inv_scale=inv_scale,
        q_lo=q_lo,
        q_hi=q_hi,
    )

    out_slab = pl.pallas_call(
        kernel,
        out_shape=jax.ShapeDtypeStruct((rows, _LANES), dtype),
        grid_spec=pltpu.PrefetchScalarGridSpec(
            num_scalar_prefetch=0,
            grid=grid,
            in_specs=[pl.BlockSpec((block_rows, _LANES), lambda i: (i, 0))],
            out_specs=pl.BlockSpec((block_rows, _LANES), lambda i: (i, 0)),
        ),
        compiler_params=pltpu.CompilerParams(
            dimension_semantics=("parallel",),
            vmem_limit_bytes=int(vmem_limit),
        ),
        cost_estimate=pl.CostEstimate(
            flops=5 * n_bulk,
            transcendentals=0,
            bytes_accessed=2 * n_bulk * itemsize,
        ),
    )(slab)

    if n_bulk != total:
        tail_out = _jnp_epilogue(flat[n_bulk:])            # < 128 elements
        return jnp.concatenate([out_slab.reshape(-1), tail_out]).reshape(orig_shape)
    return out_slab.reshape(orig_shape)


class FixedQParamsFakeQuantize:
    """JAX/Pallas port of torch.quantization.FixedQParamsFakeQuantize.

    Only per-tensor affine fake quantization is supported (as in the original).
    The enable flags are kept as Python bools (plus uint8 buffers for API
    parity) so __call__ never forces a device->host sync and stays jit-safe.
    """

    def __init__(self, scale, zero_point, quant_min=0, quant_max=255):
        assert quant_min <= quant_max, (
            "quant_min should be less than or equal to quant_max"
        )
        self.quant_min = int(quant_min)
        self.quant_max = int(quant_max)
        self._scale = float(scale)
        self._zero_point = int(zero_point)
        # registered buffers (API parity with the torch module)
        self.scale = jnp.array([self._scale], dtype=jnp.float32)
        self.zero_point = jnp.array([self._zero_point], dtype=jnp.int32)
        self.fake_quant_enabled = jnp.array([1], dtype=jnp.uint8)
        self.observer_enabled = jnp.array([1], dtype=jnp.uint8)
        self._fake_quant_enabled = True
        self._observer_enabled = True

    def enable_fake_quant(self, enabled=True):
        self._fake_quant_enabled = bool(enabled)
        self.fake_quant_enabled = jnp.array([1 if enabled else 0], dtype=jnp.uint8)

    def disable_fake_quant(self):
        self.enable_fake_quant(False)

    def enable_observer(self, enabled=True):
        self._observer_enabled = bool(enabled)
        self.observer_enabled = jnp.array([1 if enabled else 0], dtype=jnp.uint8)

    def disable_observer(self):
        self.enable_observer(False)

    def calculate_qparams(self):
        return self.scale, self.zero_point

    def __call__(self, x):
        if not self._fake_quant_enabled:
            return x
        return fake_quantize_per_tensor_affine(
            x, self._scale, self._zero_point, self.quant_min, self.quant_max
        )


# ------------------------------ reference ---------------------------------- #
def _reference(x, scale, zero_point, quant_min, quant_max):
    s = float(scale)
    inv_s = 1.0 / s
    zp = float(int(zero_point))
    q = jnp.round(x.astype(jnp.float32) * inv_s + zp)
    q = jnp.clip(q, float(quant_min), float(quant_max))
    return ((q - zp) * s).astype(x.dtype)


if __name__ == "__main__":
    key = jax.random.PRNGKey(0)

    # Typical fixed qparams (e.g. sigmoid output): scale=1/256, zero_point=0
    module = FixedQParamsFakeQuantize(
        scale=1.0 / 256.0, zero_point=0, quant_min=0, quant_max=255
    )

    # Primary test: NCHW f32, size divisible by 128 (pure kernel path).
    x = jax.random.normal(key, (2, 4, 16, 16), dtype=jnp.float32)
    out = jax.block_until_ready(module(x))
    ref = _reference(x, module._scale, module._zero_point,
                     module.quant_min, module.quant_max)
    assert out.shape == x.shape and out.dtype == x.dtype
    assert jnp.allclose(out, ref, atol=1e-6, rtol=0.0), "mismatch vs reference (f32)"

    # Secondary test: awkward size (kernel on 128-aligned bulk + jnp tail).
    x2 = jax.random.normal(jax.random.PRNGKey(1), (3, 3, 5, 7), dtype=jnp.float32)
    out2 = jax.block_until_ready(module(x2))
    ref2 = _reference(x2, module._scale, module._zero_point,
                      module.quant_min, module.quant_max)
    assert out2.shape == x2.shape and out2.dtype == x2.dtype
    assert jnp.allclose(out2, ref2, atol=1e-6, rtol=0.0), "mismatch vs reference (odd)"

    # Third test: nonzero zero_point (exercises the folded-zp clamp bounds).
    module_zp = FixedQParamsFakeQuantize(
        scale=2.0 / 256.0, zero_point=128, quant_min=0, quant_max=255
    )
    out_zp = jax.block_until_ready(module_zp(x))
    ref_zp = _reference(x, module_zp._scale, module_zp._zero_point,
                        module_zp.quant_min, module_zp.quant_max)
    assert jnp.allclose(out_zp, ref_zp, atol=1e-6, rtol=0.0), "mismatch (zp=128)"

    # Fourth test: bf16 input stays bf16 end-to-end (no extra HBM casts).
    x3 = jax.random.normal(jax.random.PRNGKey(2), (2, 4, 16, 16),
                           dtype=jnp.bfloat16)
    out3 = jax.block_until_ready(module(x3))
    ref3 = _reference(x3, module._scale, module._zero_point,
                      module.quant_min, module.quant_max)
    assert out3.shape == x3.shape and out3.dtype == x3.dtype
    assert jnp.allclose(out3.astype(jnp.float32), ref3.astype(jnp.float32),
                        atol=1e-2, rtol=0.0), "mismatch vs reference (bf16)"

    # Disabled fake-quant path is identity (no device sync, jit-safe gate).
    module.disable_fake_quant()
    out4 = module(x)
    assert out4 is x
    module.enable_fake_quant()

    print("KERNEL_OK")
</pallas_src>

<mosaic_0001>
module attributes {stable_mosaic.version = 11 : i64} {
  func.func @_fake_quant_kernel(%arg0: i32, %arg1: memref<8x128xf32, #tpu.memory_space<vmem>>, %arg2: memref<8x128xf32, #tpu.memory_space<vmem>>) attributes {dimension_semantics = [#tpu.dimension_semantics<parallel>], iteration_bounds = array<i64: 2>, scalar_prefetch = 0 : i64, scratch_operands = 0 : i64, tpu.core_type = #tpu.core_type<tc>, window_params = [{transform_indices = @transform_0, window_bounds = array<i64: 8, 128>}, {transform_indices = @transform_1, window_bounds = array<i64: 8, 128>}]} {
    %c0 = arith.constant 0 : index
    %c0_0 = arith.constant 0 : index
    %0 = vector.load %arg1[%c0, %c0_0] : memref<8x128xf32, #tpu.memory_space<vmem>>, vector<8x128xf32>
    %cst = arith.constant 2.560000e+02 : f32
    %1 = vector.broadcast %cst : f32 to vector<8x128xf32>
    %2 = arith.mulf %0, %1 : vector<8x128xf32>
    %3 = math.roundeven %2 : vector<8x128xf32>
    %cst_1 = arith.constant 0.000000e+00 : f32
    %cst_2 = arith.constant 2.550000e+02 : f32
    %4 = vector.broadcast %cst_1 : f32 to vector<8x128xf32>
    %5 = arith.maximumf %4, %3 : vector<8x128xf32>
    %6 = vector.broadcast %cst_2 : f32 to vector<8x128xf32>
    %7 = arith.minimumf %6, %5 : vector<8x128xf32>
    %cst_3 = arith.constant 3.906250e-03 : f32
    %8 = vector.broadcast %cst_3 : f32 to vector<8x128xf32>
    %9 = arith.mulf %7, %8 : vector<8x128xf32>
    %c0_4 = arith.constant 0 : index
    %c0_5 = arith.constant 0 : index
    %10 = vector.load %arg2[%c0_4, %c0_5] : memref<8x128xf32, #tpu.memory_space<vmem>>, vector<8x128xf32>
    tpu.vector_store %arg2[%c0_4, %c0_5], %9 {strides = array<i32>} : memref<8x128xf32, #tpu.memory_space<vmem>>, vector<8x128xf32>,
    return
  }
  func.func @transform_0(%arg0: i32) -> (i32, i32) {
    %c0_i32 = arith.constant 0 : i32
    %c0_i32_0 = arith.constant 0 : i32
    return %arg0, %c0_i32 : i32, i32
  }
  func.func @transform_1(%arg0: i32) -> (i32, i32) {
    %c0_i32 = arith.constant 0 : i32
    %c0_i32_0 = arith.constant 0 : i32
    return %arg0, %c0_i32 : i32, i32
  }
}

</mosaic_0001>

<bundles_post_ra>
// kernel: tpu_custom_call.1
= control target key start
LH: loop header
LB: loop body
LE: loop exit
PB: predicated region body
PF: predicated region fallthrough
CT: control target
= control target key end

     0   :  { %6 = vsyncpa [#allocation3], 0  ;;  %s528_s0 = inlined_call_operand.hbm [shape: f32[16,128], index: 0, kind: input, shape index: {}]   ;;  %s529_s1 = inlined_call_operand.hbm [shape: f32[16,128], index: 1, kind: output, shape index: {}]  }
   0x1   :  { %8 = vsyncpa [#allocation3 + $0x1], 0 }
   0x2   :  { %9 = vsyncpa [#allocation4], 0 }
   0x3   :  { %11 = vsyncpa [#allocation4 + $0x1], 0  ;;  %s401_s6 = smov 0   ;;  %s403_s7 = smov 0  }
   0x4   :  { %s405_s8 = smov 0   ;;  %s407_s9 = smov 0  }
   0x5 LB: > { %s422_s10 = sadd.s32 4294967295, %s389_s9   ;;  %s227_s11 = sadd.s32 4294967294, %s389_s9   ;;  %s389_s9 = sphi %s407_s9, %s539_s9   ;;  %s385_s8 = sphi %s405_s8, %s538_s8   ;;  %s381_s7 = sphi %s403_s7, %s537_s7   ;;  %s377_s6 = sphi %s401_s6, %s536_s6  }
   0x6   : > { %s426_s12 = sadd.s32 1, %s389_s9   ;;  %s24_s13 = sadd.s32 1, %s385_s8 }
   0x7   : > { %s21_s14 = ssub.s32 %s389_s9, %s426_s12  ;;  %p31_p0 = scmp.ne.s32.totalorder %s385_s8, %s381_s7 }
   0x8   : > { %p22_p1 = scmp.eq.s32.totalorder %s21_s14, 0  ;;  %p32_p2 = scmp.eq.s32.totalorder %s389_s9, 0 }
   0x9   : > { %p37_p3 = scmp.ne.s32.totalorder %s381_s7, %s377_s6  ;;  %p38_p4 = scmp.eq.s32.totalorder %s422_s10, 0 }
   0xa   : > { %s438_s15 = scalar_select %p22_p1, %s385_s8, %s24_s13  }
   0xb   : > { %p440_p5 = por %p32_p2, %p31_p0  ;;  %p444_p6 = por %p38_p4, %p37_p3 }
   0xc   : > { %p61_p7 = scmp.eq.s32.totalorder %s422_s10, 1  ;;  %p67_p8 = scmp.eq.s32.totalorder %s227_s11, 1 }
   0xd   : > { %p259_p10 = scmp.lt.s32.totalorder %s389_s9, 2  ;;  %s87_s20 = sand.u32 1, %s385_s8  }
   0xe   : > { %p451_p11 = por %p61_p7, %p31_p0  ;;  %p455_p12 = por %p67_p8, %p37_p3 }
   0xf   : > { %s231_s21 = sshll.u32 %s389_s9, 3  ;;  %s230_s22 = sshll.u32 %s87_s20, 3 }
  0x10   : > { %s95_s25 = scalar_lea.hbm %s528_s0, %s231_s21  ;;  %s91_s27 = scalar_lea.vmem [#allocation2], %s230_s22 }
  0x11   : > { %s97_s26 = sshll.u32 %s95_s25, 4  ;;  %s99_s28 = sshll.u32 %s91_s27, 4  ;;  %s98_s26 = int_to_ptr.hbm [resolvable:$true] %s97_s26  ;;  %s100_s28 = int_to_ptr.vmem [resolvable:$true] %s99_s28 }
  0x12   : > { %p466_p13 = pnand %p259_p10, %p440_p5  ;;  %p232_p0 = scmp.ge.s32.totalorder %s389_s9, 1 }
  0x13   : > { %p104_p1 = scmp.lt.s32.totalorder %s389_s9, 3  ;;  %s88_s30 = scalar_lea.sflag [#allocation3], %s87_s20 }
  0x14   : > { %s293_s2 = sshra.s32 %s98_s26, 4  ;;  %p297_p3 = pneg %p466_p13  ;;  %s294_s2 = int_to_ptr.hbm [resolvable:$true] %s293_s2 }
  0x15   : > { %s295_s3 = scalar_lea.hbm %s294_s2, 8  ;;  %s300_s11 = scalar_lea.hbm %s528_s0, 16 }
  0x16   : > { %p296_p2 = scmp.ne.s32.totalorder %s294_s2, %s295_s3  ;;  %p301_p5 = scmp.lt.s32.totalorder %s294_s2, %s528_s0 }
  0x17   : > { %p302_p8 = scmp.lt.s32.totalorder %s300_s11, %s295_s3 }
  0x18   : > { %p298_p4 = pnand %p297_p3, %p296_p2 }
  0x19   : > { %p303_p10 = por %p302_p8, %p301_p5 }
  0x1a   : > { %p299_p7 = pneg %p298_p4 }
  0x1c   : > { %p304_p9 = pnand %p303_p10, %p299_p7 }
  0x1e   : > { %307 = shalt.err (!%p304_p9)
}
  0x1f   : > { %254 = dma.hbm_to_vmem [thread:$0]  (!%p466_p13), %s98_s26, 128, %s100_s28, %s88_s30  }
  0x20   : > { %p105_p2 = pnand %p232_p0, %p104_p1 }
  0x21   : > { %s487_s16 = sand.u32 (!%p105_p2), 1, %s381_s7  }
  0x22   : > { %108 = sbr.rel (%p105_p2) target bundleno = 61 (0x3d), region = 24  ;;  %s233_s20 = sshll.u32 (!%p105_p2), %s487_s16, 3 }
  0x23   : > { %s111_s21 = scalar_lea.sflag (!%p105_p2), [#allocation3], %s487_s16  ;;  %s114_s22 = scalar_lea.vmem (!%p105_p2), [#allocation2], %s233_s20 }
  0x27   : > { %368 = dma.done.wait (%p444_p6), %s111_s21, 128  }
  0x28   : > { %370 = vsyncadd (%p444_p6), %s111_s21, 4294967168  ;;  %v134_v0 = vld [vmem:[%s114_s22] sm:$0xff]  ;;  %s236_s23 = sshll.u32 %s422_s10, 3  ;;  %s133_s17 = scalar_lea.vmem [#allocation5], %s233_s20 }
  0x29   : > { %v135_v1 = vmul.f32 256.0, %v134_v0  ;;  %s152_s26 = scalar_lea.hbm %s529_s1, %s236_s23  ;;  %s154_s27 = sshll.u32 %s133_s17, 4  ;;  %s155_s27 = int_to_ptr.vmem [resolvable:$true] %s154_s27 }
  0x2a   : > { %s156_s28 = sshll.u32 %s152_s26, 4  ;;  %s142_s29 = scalar_lea.sflag [#allocation4], %s487_s16  ;;  %s157_s28 = int_to_ptr.hbm [resolvable:$true] %s156_s28 }
  0x2b   : > { %v241_v2 = vcvt.f32.s32 %v135_v1  ;;  %v239_v3 = vand.u32 2147483647, %v135_v1  ;;  %v244_v5 = vand.u32 2147483648, %v135_v1  ;;  %s337_s30 = sshra.s32 %s157_s28, 4  ;;  %s343_s4 = scalar_lea.hbm %s529_s1, 16  ;;  %s338_s30 = int_to_ptr.hbm [resolvable:$true] %s337_s30 }
  0x2c   : > { %s339_s10 = scalar_lea.hbm %s338_s30, 8  ;;  %p344_p0 = scmp.lt.s32.totalorder %s338_s30, %s529_s1 }
  0x2d   : > { %v242_v4 = vcvt.s32.f32 %v241_v2  ;;  %vm240_vm0 = vcmp.lt.f32.partialorder %v239_v3, 8388608.0  ;;  %p340_p6 = scmp.ne.s32.totalorder %s338_s30, %s339_s10  ;;  %p345_p1 = scmp.lt.s32.totalorder %s343_s4, %s339_s10 }
  0x2f   : > { %v243_v6 = vand.u32 2147483647, %v242_v4  ;;  %p341_p9 = pnand %p340_p6, %p451_p11  ;;  %p346_p3 = por %p345_p1, %p344_p0 }
  0x31   : > { %v245_v7 = vor.u32 %v244_v5, %v243_v6  ;;  %p342_p13 = pneg %p341_p9 }
  0x33   : > { %v246_v8 = vsel %vm240_vm0, %v245_v7, %v135_v1  ;;  %p347_p4 = pnand %p346_p3, %p342_p13 }
  0x34   : > { %v137_v9 = vmax.f32 %v246_v8, 0.0 }
  0x36   : > { %v138_v10 = vmin.f32 %v137_v9, 255.0 }
  0x38   : > { %v139_v11 = vmul.f32 0.00390625, %v138_v10 }
  0x3a   : > { %140 = vst [vmem:[%s133_s17] sm:$0xff] %v139_v11 }
  0x3b   : > { %350 = shalt.err (!%p347_p4)
}
  0x3c   : > { %249 = dma.vmem_to_hbm [thread:$0]  (%p451_p11), %s155_s27, 128, %s157_s28, %s142_s29  }
  0x3d PF: > { %s168_s13 = sand.u32 1, %s377_s6   ;;  %p535_p7 = scmp.ge.s32.totalorder %s389_s9, 2 }
  0x3e   : > { %s169_s14 = scalar_lea.sflag [#allocation4], %s168_s13 }
  0x3f   : > { %p256_p5 = pnand %p535_p7, %p455_p12 }
  0x41   : > { %p257_p8 = pneg %p256_p5 }
  0x43   : > { %372 = dma.done.wait (%p257_p8), %s169_s14, 128  }
  0x44   : > { %374 = vsyncadd (%p257_p8), %s169_s14, 4294967168  ;;  %p14_p10 = scmp.ge.s32.totalorder %s426_s12, 4   ;;  %s536_s6 = smov %s381_s7 }
  0x45   : > { %s537_s7 = smov %s385_s8  ;;  %s538_s8 = smov %s438_s15 }
  0x46   : > { %s539_s9 = smov %s426_s12  ;;  %16 = sbr.rel (!%p14_p10) target bundleno = 5 (0x5), region = 69 }
  0x4b   :  { %175 = vsyncpa [#allocation3], 1 }
  0x4c   :  { %177 = vsyncpa [#allocation3 + $0x1], 1 }
  0x4d   :  { %178 = vsyncpa [#allocation4], 1 }
  0x4e   :  { %180 = vsyncpa [#allocation4 + $0x1], 1 }

</bundles_post_ra>
